<compile_context>
chip_gen: v6e
topology: v6e:2x2x1
jax: 0.10.0
libtpu: 0.0.40
codegen_flags: <defaults>
</compile_context>

<pallas_src>
import functools

import jax
import jax.numpy as jnp
from jax.experimental import pallas as pl
from jax.experimental.pallas import tpu as pltpu


# ---------------------------------------------------------------------------
# In-kernel helpers (traced inside the Pallas body)
# ---------------------------------------------------------------------------
def _mish(x):
    # mish(x) = x * tanh(softplus(x)) = x * ((1+e^x)^2 - 1) / ((1+e^x)^2 + 1)
    #         = x - 2x / ((1+e^x)^2 + 1)
    # One exp + one approx reciprocal (both EUP slot); the rest is cheap VPU work.
    t = jnp.exp(jnp.minimum(x, 30.0))          # clamp: ratio == 1 to f32 precision
    sq = (1.0 + t) * (1.0 + t)
    return x - (2.0 * x) * pl.reciprocal(sq + 1.0, approx=True)


def _normed_linear(x, w, b, gamma, beta, eps=1e-5):
    # Linear (MXU, f32 accumulation) + two-pass LayerNorm over the last dim.
    if w.dtype != jnp.float32:
        x = x.astype(w.dtype)                  # bf16 MXU operands; accumulation stays f32
    y = jnp.dot(x, w, preferred_element_type=jnp.float32) + b
    mu = jnp.mean(y, axis=-1, keepdims=True)
    yc = y - mu
    var = jnp.mean(yc * yc, axis=-1, keepdims=True)
    return yc * jax.lax.rsqrt(var + eps) * gamma + beta


def _unpack(p_ref):
    # (3, F) packed [bias; gamma; beta] -> three (1, F) rows (static slices).
    return p_ref[0:1, :], p_ref[1:2, :], p_ref[2:3, :]


# ---------------------------------------------------------------------------
# Pallas kernel: one batch tile per grid step, parameters VMEM-resident.
# ---------------------------------------------------------------------------
def normed_mlp_kernel(num_layers,
                      x_ref,
                      w0_ref, p0_ref,
                      wh_ref, ph_ref,
                      wo_ref, po_ref,
                      pmat_ref,
                      out_ref):
    x = x_ref[...].astype(jnp.float32)                      # x = x.float()

    # Input layer: Linear -> (dropout p=0, no-op) -> LayerNorm -> Mish
    b0, g0, be0 = _unpack(p0_ref)
    h = _mish(_normed_linear(x, w0_ref[...], b0, g0, be0))

    # Hidden layers: the SAME weights applied num_layers times (list-multiply weight
    # sharing).  Parameter loads hoisted; fori_loop(unroll=True) bounds live ranges.
    wh = wh_ref[...]
    bh, gh, beh = _unpack(ph_ref)

    def hidden_body(_, hv):
        return _mish(_normed_linear(hv, wh, bh, gh, beh))

    h = jax.lax.fori_loop(0, num_layers, hidden_body, h, unroll=True)

    # Output layer: Linear -> LayerNorm -> SimNorm
    bo, go, beo = _unpack(po_ref)
    y = _normed_linear(h, wo_ref[...], bo, go, beo)

    # SimNorm: softmax within contiguous groups of simnorm_dim features.  Group-sum
    # denominator via one MXU matmul with the resident block-diagonal ones matrix P.
    # Softmax is shift-invariant, so subtracting the per-row max equals subtracting
    # the per-group max; the clamp keeps exp() from underflowing a whole group to 0.
    shifted = jnp.maximum(y - jnp.max(y, axis=-1, keepdims=True), -60.0)
    e = jnp.exp(shifted)                                               # (tile_b, D_out)
    denom = jnp.dot(e, pmat_ref[...], preferred_element_type=jnp.float32)
    out_ref[...] = (e * pl.reciprocal(denom, approx=True)).astype(out_ref.dtype)


# ---------------------------------------------------------------------------
# Wrapper: generation-aware batch tiling, resident (single-buffered) parameters.
# ---------------------------------------------------------------------------
def _round_up(v, m):
    return (v + m - 1) // m * m


def _derive_tiling(B, d_in_p, hidden, d_out, param_bytes, max_tile_b):
    # Budget the batch tile against the chip's actual VMEM (v5e/v6e 128 MiB, v7x 64 MiB).
    try:
        vmem_cap = int(pltpu.get_tpu_info().vmem_capacity_bytes)
    except Exception:
        vmem_cap = 64 << 20                       # conservative (v7x per-TC) fallback
    budget = int(vmem_cap * 0.6)                  # headroom for compiler scratch
    # Bytes that scale with tile_b: double-buffered x/out tiles + live f32 temps.
    per_row = 4 * (2 * d_in_p + 4 * d_out + 8 * hidden)
    avail = max(budget - param_bytes, 8 * per_row)
    tile_cap = max(8, (avail // per_row) // 8 * 8)
    # Keep >=2 grid steps so dimension_semantics=("parallel",) can split the batch
    # across v7x's two TensorCores (costs one extra ~0.35us step on single-TC chips).
    half_b = max(8, _round_up((B + 1) // 2, 8))
    tile_b = int(min(tile_cap, half_b, _round_up(max_tile_b, 8)))
    vmem_limit = int(vmem_cap * 0.75)
    return tile_b, vmem_limit


def _resident_spec(arr):
    # Constant block index -> keep a single-buffered VMEM copy for all grid steps.
    try:
        return pl.BlockSpec(arr.shape, lambda i: (0, 0),
                            pipeline_mode=pl.Buffered(1))
    except (TypeError, AttributeError):           # older jax without pipeline_mode
        return pl.BlockSpec(arr.shape, lambda i: (0, 0))


def normed_mlp_forward(x, params, *, num_layers, simnorm_dim,
                       param_dtype=jnp.float32, max_tile_b=4096):
    B, d_in = x.shape
    hidden = params["w0"].shape[1]
    d_out = params["wo"].shape[1]
    assert d_out % simnorm_dim == 0

    # Zero-pad the first-layer contraction dim to a sublane multiple (exact: zero
    # columns of x / zero rows of w0 contribute nothing to the dot product).
    d_in_p = _round_up(d_in, 8)
    if d_in_p != d_in:
        x = jnp.pad(x, ((0, 0), (0, d_in_p - d_in)))
        w0 = jnp.pad(params["w0"], ((0, d_in_p - d_in), (0, 0)))
    else:
        w0 = params["w0"]

    # Weight storage dtype (bf16 recommended on v6e/v7x); bias/LN params stay f32.
    w0 = w0.astype(param_dtype)
    wh = params["wh"].astype(param_dtype)
    wo = params["wo"].astype(param_dtype)

    def pack(b, g, be):                           # (1,F)x3 -> (3,F) packed f32
        return jnp.concatenate([b, g, be], axis=0).astype(jnp.float32)

    p0 = pack(params["b0"], params["g0"], params["be0"])
    ph = pack(params["bh"], params["gh"], params["beh"])
    po = pack(params["bo"], params["go"], params["beo"])

    # Block-diagonal ones matrix for the SimNorm group sums (built once, resident).
    g_idx = jnp.arange(d_out) // simnorm_dim
    pmat = (g_idx[:, None] == g_idx[None, :]).astype(jnp.float32)      # (D_out, D_out)

    resident_arrays = (w0, p0, wh, ph, wo, po, pmat)
    param_bytes = sum(int(a.size) * a.dtype.itemsize for a in resident_arrays)
    tile_b, vmem_limit = _derive_tiling(B, d_in_p, hidden, d_out,
                                        param_bytes, max_tile_b)
    grid = (pl.cdiv(B, tile_b),)

    in_specs = [pl.BlockSpec((tile_b, d_in_p), lambda i: (i, 0))]
    in_specs += [_resident_spec(a) for a in resident_arrays]

    flops = 2 * B * (d_in_p * hidden + num_layers * hidden * hidden
                     + hidden * d_out + d_out * d_out)
    transcendentals = B * (2 * hidden * (num_layers + 1) + 2 * d_out)
    bytes_accessed = int(x.size) * x.dtype.itemsize + param_bytes + B * d_out * 4

    kernel = functools.partial(normed_mlp_kernel, num_layers)

    return pl.pallas_call(
        kernel,
        out_shape=jax.ShapeDtypeStruct((B, d_out), jnp.float32),
        grid=grid,
        in_specs=in_specs,
        out_specs=pl.BlockSpec((tile_b, d_out), lambda i: (i, 0)),
        compiler_params=pltpu.CompilerParams(
            dimension_semantics=("parallel",),
            vmem_limit_bytes=vmem_limit),
        cost_estimate=pl.CostEstimate(
            flops=int(flops),
            transcendentals=int(transcendentals),
            bytes_accessed=int(bytes_accessed)),
    )(x, *resident_arrays)


# ---------------------------------------------------------------------------
# Pure-JAX reference (mirrors the PyTorch forward exactly) for verification.
# ---------------------------------------------------------------------------
def normed_mlp_reference(x, params, *, num_layers, simnorm_dim):
    def layer(h, w, b, g, be, act):
        y = h @ w + b
        mu = jnp.mean(y, axis=-1, keepdims=True)
        var = jnp.mean(jnp.square(y - mu), axis=-1, keepdims=True)
        y = (y - mu) / jnp.sqrt(var + 1e-5) * g + be
        return act(y) if act is not None else y

    def mish(v):
        return v * jnp.tanh(jax.nn.softplus(v))

    def simnorm(v):
        shp = v.shape
        v = v.reshape(*shp[:-1], -1, simnorm_dim)
        v = jax.nn.softmax(v, axis=-1)
        return v.reshape(shp)

    h = x.astype(jnp.float32)
    h = layer(h, params["w0"], params["b0"], params["g0"], params["be0"], mish)
    for _ in range(num_layers):
        h = layer(h, params["wh"], params["bh"], params["gh"], params["beh"], mish)
    return layer(h, params["wo"], params["bo"], params["go"], params["beo"], simnorm)


# ---------------------------------------------------------------------------
# Parameter init (deterministic, PyTorch nn.Linear-style uniform init)
# ---------------------------------------------------------------------------
def init_params(key, d_in, hidden, d_out):
    ks = jax.random.split(key, 6)

    def linear(kw, kb, fan_in, fan_out):
        bound = 1.0 / jnp.sqrt(fan_in)
        w = jax.random.uniform(kw, (fan_in, fan_out), jnp.float32, -bound, bound)
        b = jax.random.uniform(kb, (1, fan_out), jnp.float32, -bound, bound)
        return w, b

    w0, b0 = linear(ks[0], ks[1], d_in, hidden)
    wh, bh = linear(ks[2], ks[3], hidden, hidden)
    wo, bo = linear(ks[4], ks[5], hidden, d_out)
    return dict(
        w0=w0, b0=b0, g0=jnp.ones((1, hidden), jnp.float32), be0=jnp.zeros((1, hidden), jnp.float32),
        wh=wh, bh=bh, gh=jnp.ones((1, hidden), jnp.float32), beh=jnp.zeros((1, hidden), jnp.float32),
        wo=wo, bo=bo, go=jnp.ones((1, d_out), jnp.float32), beo=jnp.zeros((1, d_out), jnp.float32),
    )


if __name__ == "__main__":
    B, D_IN, HIDDEN, D_OUT = 8, 24, 32, 16
    NUM_LAYERS, SIMNORM_DIM = 2, 8

    key = jax.random.PRNGKey(0)
    k_x, k_p = jax.random.split(key)
    x = jax.random.normal(k_x, (B, D_IN), jnp.float32)
    params = init_params(k_p, D_IN, HIDDEN, D_OUT)

    ref = normed_mlp_reference(x, params, num_layers=NUM_LAYERS, simnorm_dim=SIMNORM_DIM)

    # f32 weights: tight check (tolerance accounts for the approx-EUP reciprocals).
    out = normed_mlp_forward(x, params, num_layers=NUM_LAYERS, simnorm_dim=SIMNORM_DIM)
    out = jax.block_until_ready(out)
    assert out.shape == (B, D_OUT)
    assert jnp.allclose(out, ref, rtol=1e-2, atol=5e-3), "Pallas (f32) mismatch vs reference"

    # bf16 weight storage (v6e/v7x deployment path): verify it compiles, runs and
    # stays close to the f32 reference (bf16 weight rounding only).
    out_bf16 = normed_mlp_forward(x, params, num_layers=NUM_LAYERS,
                                  simnorm_dim=SIMNORM_DIM, param_dtype=jnp.bfloat16)
    out_bf16 = jax.block_until_ready(out_bf16)
    assert out_bf16.shape == (B, D_OUT)
    assert bool(jnp.isfinite(out_bf16).all())
    assert jnp.allclose(out_bf16, ref, rtol=5e-2, atol=5e-2), "Pallas (bf16) mismatch vs reference"

    print("KERNEL_OK")
</pallas_src>

<mosaic_0001>
module attributes {stable_mosaic.version = 11 : i64} {
  func.func @normed_mlp_kernel(%arg0: i32, %arg1: memref<8x24xf32, #tpu.memory_space<vmem>>, %arg2: memref<24x32xf32, #tpu.memory_space<vmem>>, %arg3: memref<3x32xf32, #tpu.memory_space<vmem>>, %arg4: memref<32x32xf32, #tpu.memory_space<vmem>>, %arg5: memref<3x32xf32, #tpu.memory_space<vmem>>, %arg6: memref<32x16xf32, #tpu.memory_space<vmem>>, %arg7: memref<3x16xf32, #tpu.memory_space<vmem>>, %arg8: memref<16x16xf32, #tpu.memory_space<vmem>>, %arg9: memref<8x16xf32, #tpu.memory_space<vmem>>) attributes {dimension_semantics = [#tpu.dimension_semantics<parallel>], iteration_bounds = array<i64: 1>, scalar_prefetch = 0 : i64, scratch_operands = 0 : i64, tpu.core_type = #tpu.core_type<tc>, window_params = [{transform_indices = @transform_0, window_bounds = array<i64: 8, 24>}, {pipeline_mode = #tpu.pipeline_mode<synchronous>, transform_indices = @transform_1, window_bounds = array<i64: 24, 32>}, {pipeline_mode = #tpu.pipeline_mode<synchronous>, transform_indices = @transform_2, window_bounds = array<i64: 3, 32>}, {pipeline_mode = #tpu.pipeline_mode<synchronous>, transform_indices = @transform_3, window_bounds = array<i64: 32, 32>}, {pipeline_mode = #tpu.pipeline_mode<synchronous>, transform_indices = @transform_4, window_bounds = array<i64: 3, 32>}, {pipeline_mode = #tpu.pipeline_mode<synchronous>, transform_indices = @transform_5, window_bounds = array<i64: 32, 16>}, {pipeline_mode = #tpu.pipeline_mode<synchronous>, transform_indices = @transform_6, window_bounds = array<i64: 3, 16>}, {pipeline_mode = #tpu.pipeline_mode<synchronous>, transform_indices = @transform_7, window_bounds = array<i64: 16, 16>}, {transform_indices = @transform_8, window_bounds = array<i64: 8, 16>}]} {
    %c0 = arith.constant 0 : index
    %c0_0 = arith.constant 0 : index
    %0 = vector.load %arg1[%c0, %c0_0] : memref<8x24xf32, #tpu.memory_space<vmem>>, vector<8x24xf32>
    %c0_1 = arith.constant 0 : index
    %c0_2 = arith.constant 0 : index
    %1 = vector.load %arg3[%c0_1, %c0_2] : memref<3x32xf32, #tpu.memory_space<vmem>>, vector<1x32xf32>
    %c1 = arith.constant 1 : index
    %c0_3 = arith.constant 0 : index
    %2 = vector.load %arg3[%c1, %c0_3] : memref<3x32xf32, #tpu.memory_space<vmem>>, vector<1x32xf32>
    %c2 = arith.constant 2 : index
    %c0_4 = arith.constant 0 : index
    %3 = vector.load %arg3[%c2, %c0_4] : memref<3x32xf32, #tpu.memory_space<vmem>>, vector<1x32xf32>
    %c0_5 = arith.constant 0 : index
    %c0_6 = arith.constant 0 : index
    %4 = vector.load %arg2[%c0_5, %c0_6] : memref<24x32xf32, #tpu.memory_space<vmem>>, vector<24x32xf32>
    %cst = arith.constant dense<0.000000e+00> : vector<8x32xf32>
    %5 = tpu.matmul %0, %4, %cst {dimension_numbers = #tpu.dot_dimension_numbers<[1], [0], [0], [1], [0, 0, 1, 1], [], []>} : vector<8x24xf32>, vector<24x32xf32>, vector<8x32xf32> -> vector<8x32xf32>
    %6 = vector.broadcast %1 : vector<1x32xf32> to vector<8x32xf32>
    %7 = arith.addf %5, %6 : vector<8x32xf32>
    %cst_7 = arith.constant dense<0.000000e+00> : vector<8xf32>
    %8 = vector.multi_reduction <add>, %7, %cst_7 [1] : vector<8x32xf32> to vector<8xf32>
    %9 = vector.shape_cast %8 : vector<8xf32> to vector<8x1xf32>
    %cst_8 = arith.constant 3.200000e+01 : f32
    %10 = vector.broadcast %cst_8 : f32 to vector<8x1xf32>
    %11 = arith.divf %9, %10 : vector<8x1xf32>
    %12 = vector.broadcast %11 : vector<8x1xf32> to vector<8x32xf32>
    %13 = arith.subf %7, %12 : vector<8x32xf32>
    %14 = arith.mulf %13, %13 : vector<8x32xf32>
    %cst_9 = arith.constant dense<0.000000e+00> : vector<8xf32>
    %15 = vector.multi_reduction <add>, %14, %cst_9 [1] : vector<8x32xf32> to vector<8xf32>
    %16 = vector.shape_cast %15 : vector<8xf32> to vector<8x1xf32>
    %cst_10 = arith.constant 3.200000e+01 : f32
    %17 = vector.broadcast %cst_10 : f32 to vector<8x1xf32>
    %18 = arith.divf %16, %17 : vector<8x1xf32>
    %cst_11 = arith.constant 9.99999974E-6 : f32
    %19 = vector.broadcast %cst_11 : f32 to vector<8x1xf32>
    %20 = arith.addf %18, %19 : vector<8x1xf32>
    %21 = math.rsqrt %20 : vector<8x1xf32>
    %22 = vector.broadcast %21 : vector<8x1xf32> to vector<8x32xf32>
    %23 = arith.mulf %13, %22 : vector<8x32xf32>
    %24 = vector.broadcast %2 : vector<1x32xf32> to vector<8x32xf32>
    %25 = arith.mulf %23, %24 : vector<8x32xf32>
    %26 = vector.broadcast %3 : vector<1x32xf32> to vector<8x32xf32>
    %27 = arith.addf %25, %26 : vector<8x32xf32>
    %cst_12 = arith.constant 3.000000e+01 : f32
    %28 = vector.broadcast %cst_12 : f32 to vector<8x32xf32>
    %29 = arith.minimumf %27, %28 : vector<8x32xf32>
    %30 = math.exp %29 : vector<8x32xf32>
    %cst_13 = arith.constant 1.000000e+00 : f32
    %31 = vector.broadcast %cst_13 : f32 to vector<8x32xf32>
    %32 = arith.addf %31, %30 : vector<8x32xf32>
    %cst_14 = arith.constant 1.000000e+00 : f32
    %33 = vector.broadcast %cst_14 : f32 to vector<8x32xf32>
    %34 = arith.addf %33, %30 : vector<8x32xf32>
    %35 = arith.mulf %32, %34 : vector<8x32xf32>
    %cst_15 = arith.constant 2.000000e+00 : f32
    %36 = vector.broadcast %cst_15 : f32 to vector<8x32xf32>
    %37 = arith.mulf %36, %27 : vector<8x32xf32>
    %cst_16 = arith.constant 1.000000e+00 : f32
    %38 = vector.broadcast %cst_16 : f32 to vector<8x32xf32>
    %39 = arith.addf %35, %38 : vector<8x32xf32>
    %40 = tpu.reciprocal %39 {approx = true} : vector<8x32xf32> -> vector<8x32xf32>
    %41 = arith.mulf %37, %40 : vector<8x32xf32>
    %42 = arith.subf %27, %41 : vector<8x32xf32>
    %c0_17 = arith.constant 0 : index
    %c0_18 = arith.constant 0 : index
    %43 = vector.load %arg4[%c0_17, %c0_18] : memref<32x32xf32, #tpu.memory_space<vmem>>, vector<32x32xf32>
    %c0_19 = arith.constant 0 : index
    %c0_20 = arith.constant 0 : index
    %44 = vector.load %arg5[%c0_19, %c0_20] : memref<3x32xf32, #tpu.memory_space<vmem>>, vector<1x32xf32>
    %c1_21 = arith.constant 1 : index
    %c0_22 = arith.constant 0 : index
    %45 = vector.load %arg5[%c1_21, %c0_22] : memref<3x32xf32, #tpu.memory_space<vmem>>, vector<1x32xf32>
    %c2_23 = arith.constant 2 : index
    %c0_24 = arith.constant 0 : index
    %46 = vector.load %arg5[%c2_23, %c0_24] : memref<3x32xf32, #tpu.memory_space<vmem>>, vector<1x32xf32>
    %c0_i32 = arith.constant 0 : i32
    %cst_25 = arith.constant dense<0.000000e+00> : vector<8x32xf32>
    %47 = tpu.matmul %42, %43, %cst_25 {dimension_numbers = #tpu.dot_dimension_numbers<[1], [0], [0], [1], [0, 0, 1, 1], [], []>} : vector<8x32xf32>, vector<32x32xf32>, vector<8x32xf32> -> vector<8x32xf32>
    %48 = vector.broadcast %44 : vector<1x32xf32> to vector<8x32xf32>
    %49 = arith.addf %47, %48 : vector<8x32xf32>
    %cst_26 = arith.constant dense<0.000000e+00> : vector<8xf32>
    %50 = vector.multi_reduction <add>, %49, %cst_26 [1] : vector<8x32xf32> to vector<8xf32>
    %51 = vector.shape_cast %50 : vector<8xf32> to vector<8x1xf32>
    %cst_27 = arith.constant 3.200000e+01 : f32
    %52 = vector.broadcast %cst_27 : f32 to vector<8x1xf32>
    %53 = arith.divf %51, %52 : vector<8x1xf32>
    %54 = vector.broadcast %53 : vector<8x1xf32> to vector<8x32xf32>
    %55 = arith.subf %49, %54 : vector<8x32xf32>
    %56 = arith.mulf %55, %55 : vector<8x32xf32>
    %cst_28 = arith.constant dense<0.000000e+00> : vector<8xf32>
    %57 = vector.multi_reduction <add>, %56, %cst_28 [1] : vector<8x32xf32> to vector<8xf32>
    %58 = vector.shape_cast %57 : vector<8xf32> to vector<8x1xf32>
    %cst_29 = arith.constant 3.200000e+01 : f32
    %59 = vector.broadcast %cst_29 : f32 to vector<8x1xf32>
    %60 = arith.divf %58, %59 : vector<8x1xf32>
    %cst_30 = arith.constant 9.99999974E-6 : f32
    %61 = vector.broadcast %cst_30 : f32 to vector<8x1xf32>
    %62 = arith.addf %60, %61 : vector<8x1xf32>
    %63 = math.rsqrt %62 : vector<8x1xf32>
    %64 = vector.broadcast %63 : vector<8x1xf32> to vector<8x32xf32>
    %65 = arith.mulf %55, %64 : vector<8x32xf32>
    %66 = vector.broadcast %45 : vector<1x32xf32> to vector<8x32xf32>
    %67 = arith.mulf %65, %66 : vector<8x32xf32>
    %68 = vector.broadcast %46 : vector<1x32xf32> to vector<8x32xf32>
    %69 = arith.addf %67, %68 : vector<8x32xf32>
    %cst_31 = arith.constant 3.000000e+01 : f32
    %70 = vector.broadcast %cst_31 : f32 to vector<8x32xf32>
    %71 = arith.minimumf %69, %70 : vector<8x32xf32>
    %72 = math.exp %71 : vector<8x32xf32>
    %cst_32 = arith.constant 1.000000e+00 : f32
    %73 = vector.broadcast %cst_32 : f32 to vector<8x32xf32>
    %74 = arith.addf %73, %72 : vector<8x32xf32>
    %cst_33 = arith.constant 1.000000e+00 : f32
    %75 = vector.broadcast %cst_33 : f32 to vector<8x32xf32>
    %76 = arith.addf %75, %72 : vector<8x32xf32>
    %77 = arith.mulf %74, %76 : vector<8x32xf32>
    %cst_34 = arith.constant 2.000000e+00 : f32
    %78 = vector.broadcast %cst_34 : f32 to vector<8x32xf32>
    %79 = arith.mulf %78, %69 : vector<8x32xf32>
    %cst_35 = arith.constant 1.000000e+00 : f32
    %80 = vector.broadcast %cst_35 : f32 to vector<8x32xf32>
    %81 = arith.addf %77, %80 : vector<8x32xf32>
    %82 = tpu.reciprocal %81 {approx = true} : vector<8x32xf32> -> vector<8x32xf32>
    %83 = arith.mulf %79, %82 : vector<8x32xf32>
    %84 = arith.subf %69, %83 : vector<8x32xf32>
    %c1_i32 = arith.constant 1 : i32
    %cst_36 = arith.constant dense<0.000000e+00> : vector<8x32xf32>
    %85 = tpu.matmul %84, %43, %cst_36 {dimension_numbers = #tpu.dot_dimension_numbers<[1], [0], [0], [1], [0, 0, 1, 1], [], []>} : vector<8x32xf32>, vector<32x32xf32>, vector<8x32xf32> -> vector<8x32xf32>
    %86 = vector.broadcast %44 : vector<1x32xf32> to vector<8x32xf32>
    %87 = arith.addf %85, %86 : vector<8x32xf32>
    %cst_37 = arith.constant dense<0.000000e+00> : vector<8xf32>
    %88 = vector.multi_reduction <add>, %87, %cst_37 [1] : vector<8x32xf32> to vector<8xf32>
    %89 = vector.shape_cast %88 : vector<8xf32> to vector<8x1xf32>
    %cst_38 = arith.constant 3.200000e+01 : f32
    %90 = vector.broadcast %cst_38 : f32 to vector<8x1xf32>
    %91 = arith.divf %89, %90 : vector<8x1xf32>
    %92 = vector.broadcast %91 : vector<8x1xf32> to vector<8x32xf32>
    %93 = arith.subf %87, %92 : vector<8x32xf32>
    %94 = arith.mulf %93, %93 : vector<8x32xf32>
    %cst_39 = arith.constant dense<0.000000e+00> : vector<8xf32>
    %95 = vector.multi_reduction <add>, %94, %cst_39 [1] : vector<8x32xf32> to vector<8xf32>
    %96 = vector.shape_cast %95 : vector<8xf32> to vector<8x1xf32>
    %cst_40 = arith.constant 3.200000e+01 : f32
    %97 = vector.broadcast %cst_40 : f32 to vector<8x1xf32>
    %98 = arith.divf %96, %97 : vector<8x1xf32>
    %cst_41 = arith.constant 9.99999974E-6 : f32
    %99 = vector.broadcast %cst_41 : f32 to vector<8x1xf32>
    %100 = arith.addf %98, %99 : vector<8x1xf32>
    %101 = math.rsqrt %100 : vector<8x1xf32>
    %102 = vector.broadcast %101 : vector<8x1xf32> to vector<8x32xf32>
    %103 = arith.mulf %93, %102 : vector<8x32xf32>
    %104 = vector.broadcast %45 : vector<1x32xf32> to vector<8x32xf32>
    %105 = arith.mulf %103, %104 : vector<8x32xf32>
    %106 = vector.broadcast %46 : vector<1x32xf32> to vector<8x32xf32>
    %107 = arith.addf %105, %106 : vector<8x32xf32>
    %cst_42 = arith.constant 3.000000e+01 : f32
    %108 = vector.broadcast %cst_42 : f32 to vector<8x32xf32>
    %109 = arith.minimumf %107, %108 : vector<8x32xf32>
    %110 = math.exp %109 : vector<8x32xf32>
    %cst_43 = arith.constant 1.000000e+00 : f32
    %111 = vector.broadcast %cst_43 : f32 to vector<8x32xf32>
    %112 = arith.addf %111, %110 : vector<8x32xf32>
    %cst_44 = arith.constant 1.000000e+00 : f32
    %113 = vector.broadcast %cst_44 : f32 to vector<8x32xf32>
    %114 = arith.addf %113, %110 : vector<8x32xf32>
    %115 = arith.mulf %112, %114 : vector<8x32xf32>
    %cst_45 = arith.constant 2.000000e+00 : f32
    %116 = vector.broadcast %cst_45 : f32 to vector<8x32xf32>
    %117 = arith.mulf %116, %107 : vector<8x32xf32>
    %cst_46 = arith.constant 1.000000e+00 : f32
    %118 = vector.broadcast %cst_46 : f32 to vector<8x32xf32>
    %119 = arith.addf %115, %118 : vector<8x32xf32>
    %120 = tpu.reciprocal %119 {approx = true} : vector<8x32xf32> -> vector<8x32xf32>
    %121 = arith.mulf %117, %120 : vector<8x32xf32>
    %122 = arith.subf %107, %121 : vector<8x32xf32>
    %c0_47 = arith.constant 0 : index
    %c0_48 = arith.constant 0 : index
    %123 = vector.load %arg7[%c0_47, %c0_48] : memref<3x16xf32, #tpu.memory_space<vmem>>, vector<1x16xf32>
    %c1_49 = arith.constant 1 : index
    %c0_50 = arith.constant 0 : index
    %124 = vector.load %arg7[%c1_49, %c0_50] : memref<3x16xf32, #tpu.memory_space<vmem>>, vector<1x16xf32>
    %c2_51 = arith.constant 2 : index
    %c0_52 = arith.constant 0 : index
    %125 = vector.load %arg7[%c2_51, %c0_52] : memref<3x16xf32, #tpu.memory_space<vmem>>, vector<1x16xf32>
    %c0_53 = arith.constant 0 : index
    %c0_54 = arith.constant 0 : index
    %126 = vector.load %arg6[%c0_53, %c0_54] : memref<32x16xf32, #tpu.memory_space<vmem>>, vector<32x16xf32>
    %cst_55 = arith.constant dense<0.000000e+00> : vector<8x16xf32>
    %127 = tpu.matmul %122, %126, %cst_55 {dimension_numbers = #tpu.dot_dimension_numbers<[1], [0], [0], [1], [0, 0, 1, 1], [], []>} : vector<8x32xf32>, vector<32x16xf32>, vector<8x16xf32> -> vector<8x16xf32>
    %128 = vector.broadcast %123 : vector<1x16xf32> to vector<8x16xf32>
    %129 = arith.addf %127, %128 : vector<8x16xf32>
    %cst_56 = arith.constant dense<0.000000e+00> : vector<8xf32>
    %130 = vector.multi_reduction <add>, %129, %cst_56 [1] : vector<8x16xf32> to vector<8xf32>
    %131 = vector.shape_cast %130 : vector<8xf32> to vector<8x1xf32>
    %cst_57 = arith.constant 1.600000e+01 : f32
    %132 = vector.broadcast %cst_57 : f32 to vector<8x1xf32>
    %133 = arith.divf %131, %132 : vector<8x1xf32>
    %134 = vector.broadcast %133 : vector<8x1xf32> to vector<8x16xf32>
    %135 = arith.subf %129, %134 : vector<8x16xf32>
    %136 = arith.mulf %135, %135 : vector<8x16xf32>
    %cst_58 = arith.constant dense<0.000000e+00> : vector<8xf32>
    %137 = vector.multi_reduction <add>, %136, %cst_58 [1] : vector<8x16xf32> to vector<8xf32>
    %138 = vector.shape_cast %137 : vector<8xf32> to vector<8x1xf32>
    %cst_59 = arith.constant 1.600000e+01 : f32
    %139 = vector.broadcast %cst_59 : f32 to vector<8x1xf32>
    %140 = arith.divf %138, %139 : vector<8x1xf32>
    %cst_60 = arith.constant 9.99999974E-6 : f32
    %141 = vector.broadcast %cst_60 : f32 to vector<8x1xf32>
    %142 = arith.addf %140, %141 : vector<8x1xf32>
    %143 = math.rsqrt %142 : vector<8x1xf32>
    %144 = vector.broadcast %143 : vector<8x1xf32> to vector<8x16xf32>
    %145 = arith.mulf %135, %144 : vector<8x16xf32>
    %146 = vector.broadcast %124 : vector<1x16xf32> to vector<8x16xf32>
    %147 = arith.mulf %145, %146 : vector<8x16xf32>
    %148 = vector.broadcast %125 : vector<1x16xf32> to vector<8x16xf32>
    %149 = arith.addf %147, %148 : vector<8x16xf32>
    %cst_61 = arith.constant dense<0xFF800000> : vector<8xf32>
    %150 = vector.multi_reduction <maximumf>, %149, %cst_61 [1] : vector<8x16xf32> to vector<8xf32>
    %151 = vector.shape_cast %150 : vector<8xf32> to vector<8x1xf32>
    %152 = vector.broadcast %151 : vector<8x1xf32> to vector<8x16xf32>
    %153 = arith.subf %149, %152 : vector<8x16xf32>
    %cst_62 = arith.constant -6.000000e+01 : f32
    %154 = vector.broadcast %cst_62 : f32 to vector<8x16xf32>
    %155 = arith.maximumf %153, %154 : vector<8x16xf32>
    %156 = math.exp %155 : vector<8x16xf32>
    %c0_63 = arith.constant 0 : index
    %c0_64 = arith.constant 0 : index
    %157 = vector.load %arg8[%c0_63, %c0_64] : memref<16x16xf32, #tpu.memory_space<vmem>>, vector<16x16xf32>
    %cst_65 = arith.constant dense<0.000000e+00> : vector<8x16xf32>
    %158 = tpu.matmul %156, %157, %cst_65 {dimension_numbers = #tpu.dot_dimension_numbers<[1], [0], [0], [1], [0, 0, 1, 1], [], []>} : vector<8x16xf32>, vector<16x16xf32>, vector<8x16xf32> -> vector<8x16xf32>
    %159 = tpu.reciprocal %158 {approx = true} : vector<8x16xf32> -> vector<8x16xf32>
    %160 = arith.mulf %156, %159 : vector<8x16xf32>
    %c0_66 = arith.constant 0 : index
    %c0_67 = arith.constant 0 : index
    %161 = vector.load %arg9[%c0_66, %c0_67] : memref<8x16xf32, #tpu.memory_space<vmem>>, vector<8x16xf32>
    tpu.vector_store %arg9[%c0_66, %c0_67], %160 {strides = array<i32>} : memref<8x16xf32, #tpu.memory_space<vmem>>, vector<8x16xf32>,
    return
  }
  func.func @transform_0(%arg0: i32) -> (i32, i32) {
    %c0_i32 = arith.constant 0 : i32
    %c0_i32_0 = arith.constant 0 : i32
    return %arg0, %c0_i32 : i32, i32
  }
  func.func @transform_1(%arg0: i32) -> (i32, i32) {
    %c0_i32 = arith.constant 0 : i32
    %c0_i32_0 = arith.constant 0 : i32
    %c0_i32_1 = arith.constant 0 : i32
    return %c0_i32, %c0_i32_0 : i32, i32
  }
  func.func @transform_2(%arg0: i32) -> (i32, i32) {
    %c0_i32 = arith.constant 0 : i32
    %c0_i32_0 = arith.constant 0 : i32
    %c0_i32_1 = arith.constant 0 : i32
    return %c0_i32, %c0_i32_0 : i32, i32
  }
  func.func @transform_3(%arg0: i32) -> (i32, i32) {
    %c0_i32 = arith.constant 0 : i32
    %c0_i32_0 = arith.constant 0 : i32
    %c0_i32_1 = arith.constant 0 : i32
    return %c0_i32, %c0_i32_0 : i32, i32
  }
  func.func @transform_4(%arg0: i32) -> (i32, i32) {
    %c0_i32 = arith.constant 0 : i32
    %c0_i32_0 = arith.constant 0 : i32
    %c0_i32_1 = arith.constant 0 : i32
    return %c0_i32, %c0_i32_0 : i32, i32
  }
  func.func @transform_5(%arg0: i32) -> (i32, i32) {
    %c0_i32 = arith.constant 0 : i32
    %c0_i32_0 = arith.constant 0 : i32
    %c0_i32_1 = arith.constant 0 : i32
    return %c0_i32, %c0_i32_0 : i32, i32
  }
  func.func @transform_6(%arg0: i32) -> (i32, i32) {
    %c0_i32 = arith.constant 0 : i32
    %c0_i32_0 = arith.constant 0 : i32
    %c0_i32_1 = arith.constant 0 : i32
    return %c0_i32, %c0_i32_0 : i32, i32
  }
  func.func @transform_7(%arg0: i32) -> (i32, i32) {
    %c0_i32 = arith.constant 0 : i32
    %c0_i32_0 = arith.constant 0 : i32
    %c0_i32_1 = arith.constant 0 : i32
    return %c0_i32, %c0_i32_0 : i32, i32
  }
  func.func @transform_8(%arg0: i32) -> (i32, i32) {
    %c0_i32 = arith.constant 0 : i32
    %c0_i32_0 = arith.constant 0 : i32
    return %arg0, %c0_i32 : i32, i32
  }
}

</mosaic_0001>

<bundles_post_ra>
// kernel: tpu_custom_call.1
= control target key start
LH: loop header
LB: loop body
LE: loop exit
PB: predicated region body
PF: predicated region fallthrough
CT: control target
= control target key end

     0   :  { %13 = vsyncpa [#allocation3], 0  ;;  %s969_s0 = inlined_call_operand.hbm [shape: f32[8,24], index: 0, kind: input, shape index: {}]   ;;  %s970_s1 = inlined_call_operand.hbm [shape: f32[24,32], index: 1, kind: input, shape index: {}]   ;;  %s971_s2 = inlined_call_operand.vmem [shape: f32[3,32], index: 2, kind: input, shape index: {}]   ;;  %s972_s3 = inlined_call_operand.vmem [shape: f32[32,32], index: 3, kind: input, shape index: {}]   ;;  %s973_s4 = inlined_call_operand.hbm [shape: f32[3,32], index: 4, kind: input, shape index: {}]   ;;  %s974_s5 = inlined_call_operand.vmem [shape: f32[32,16], index: 5, kind: input, shape index: {}]   ;;  %s975_s6 = inlined_call_operand.vmem [shape: f32[3,16], index: 6, kind: input, shape index: {}]   ;;  %s976_s7 = inlined_call_operand.vmem [shape: f32[16,16], index: 7, kind: input, shape index: {}]   ;;  %s977_s8 = inlined_call_operand.hbm [shape: f32[8,16], index: 8, kind: output, shape index: {}]  }
   0x1   :  { %14 = vsyncpa [#allocation6], 0 }
   0x2   :  { %15 = vsyncpa [#allocation4], 0  ;;  %s815_s27 = smov [#allocation5]  }
   0x3   :  { %s31_s28 = sshll.u32 %s815_s27, 4  ;;  %s32_s28 = int_to_ptr.vmem [resolvable:$true] %s31_s28 }
   0x4   :  { %s737_s29 = scalar_lea.vmem %s32_s28, 384  ;;  %p742_p1 = scmp.lt.s32.totalorder %s32_s28, %s32_s28 }
   0x5   :  { %p738_p0 = scmp.ne.s32.totalorder %s32_s28, %s737_s29  ;;  %p743_p2 = scmp.lt.s32.totalorder %s737_s29, %s737_s29 }
   0x7   :  { %p744_p3 = por %p743_p2, %p742_p1 }
   0x9   :  { %p745_p4 = pnand %p744_p3, %p738_p0 }
   0xb   :  { %748 = shalt.err (!%p745_p4)
}
   0xc   :  { %s816_s30 = smov 128   ;;  %s817_s9 = smov 8  }
   0xd   :  { %37 = dma.hbm_to_vmem [thread:$0]  %s970_s1, 384, %s32_s28, [#allocation6], %s816_s30, %s816_s30, %s817_s9  }
   0xe   :  { %s818_s12 = smov [#allocation2]   ;;  %s819_s14 = smov [#allocation7]  }
   0xf   :  { %s22_s13 = sshll.u32 %s818_s12, 4  ;;  %s48_s15 = sshll.u32 %s819_s14, 4  ;;  %s23_s13 = int_to_ptr.vmem [resolvable:$true] %s22_s13  ;;  %s49_s15 = int_to_ptr.vmem [resolvable:$true] %s48_s15 }
  0x10   :  { %s757_s16 = scalar_lea.vmem %s23_s13, 128  ;;  %p762_p6 = scmp.lt.s32.totalorder %s23_s13, %s23_s13 }
  0x11   :  { %p758_p5 = scmp.ne.s32.totalorder %s23_s13, %s757_s16  ;;  %p763_p7 = scmp.lt.s32.totalorder %s757_s16, %s757_s16 }
  0x13   :  { %p764_p8 = por %p763_p7, %p762_p6 }
  0x15   :  { %p765_p9 = pnand %p764_p8, %p758_p5 }
  0x17   :  { %768 = shalt.err (!%p765_p9)
}
  0x18   :  { %25 = dma.hbm_to_vmem [thread:$0]  %s969_s0, 128, %s23_s13, [#allocation3]  }
  0x19   :  { %s777_s19 = scalar_lea.vmem %s49_s15, 64  ;;  %p782_p11 = scmp.lt.s32.totalorder %s49_s15, %s49_s15 }
  0x1a   :  { %p778_p10 = scmp.ne.s32.totalorder %s49_s15, %s777_s19  ;;  %p783_p12 = scmp.lt.s32.totalorder %s777_s19, %s777_s19 }
  0x1c   :  { %p784_p13 = por %p783_p12, %p782_p11 }
  0x1e   :  { %p785_p0 = pnand %p784_p13, %p778_p10 }
  0x20   :  { %788 = shalt.err (!%p785_p0)
}
  0x21   :  { %51 = dma.hbm_to_vmem [thread:$0]  %s973_s4, 64, %s49_s15, [#allocation6]  }
  0x22   :  { %809 = dma.done.wait [#allocation3], 128  }
  0x23   :  { %810 = vsyncadd [#allocation3], 4294967168 }
  0x24   :  { %811 = dma.done.wait [#allocation6], 448  }
  0x25   :  { %812 = vsyncadd [#allocation6], 4294966848  ;;  %v820_v0 = vmov 0.0   ;;  %vm821_vm0 = vmmov 0   ;;  %v73_v1 = vld [vmem:[#allocation5 + $0x10] sm:$0xff]  ;;  %v72_v2 = vld [vmem:[#allocation5 + $0x8] sm:$0xff] }
  0x26   :  { %648 = vmatprep.subr.mxu0 %v820_v0  ;;  %654 = vmatprep.mubr.msk.f32.mxu0 %vm821_vm0, %v820_v0  ;;  %v71_v3 = vld [vmem:[#allocation5] sm:$0xff]  ;;  %v67_v4 = vld [vmem:[#allocation2] sm:$0xff]  ;;  %vm78_vm1 = vcmask 195584   ;;  %vm152_vm2 = vcmask 261120   ;;  %v190_v15 = vld [vmem:[%s972_s3 + $0x18] sm:$0xff]  ;;  %vm486_vm3 = vcmask 130048  }
  0x27   :  { %657 = vmatprep.subr.mxu1 %v820_v0  ;;  %665 = vmatprep.mubr.msk.f32.mxu1 %vm821_vm0, %v820_v0  ;;  %v612_v5 = vld [vmem:[%s971_s2] ss:$0 sm:$0xff]  ;;  %v189_v16 = vld [vmem:[%s972_s3 + $0x10] sm:$0xff]  ;;  %v188_v17 = vld [vmem:[%s972_s3 + $0x8] sm:$0xff] }
  0x28   :  { %649 = vmatpush3.msra.mxu0 %v73_v1  ;;  %658 = vmatpush3.msra.mxu1 %v190_v15  ;;  %v187_v18 = vld [vmem:[%s972_s3] sm:$0xff] }
  0x29   :  { %650 = vmatprep.subr.mxu0 %v820_v0  ;;  %659 = vmatprep.subr.mxu1 %v820_v0  ;;  %v614_v23 = vld [vmem:[%s971_s2 + $0x1] ss:$0 sm:$0xff]  ;;  %v615_v25 = vld [vmem:[%s971_s2 + $0x2] ss:$0 sm:$0xff]  ;;  %v616_v38 = vld [vmem:[#allocation7] ss:$0 sm:$0xff] }
  0x2a   :  { %651 = vmatpush3.msra.mxu0 %v72_v2  ;;  %660 = vmatpush3.msra.mxu1 %v189_v16  ;;  %v618_v52 = vld [vmem:[#allocation7 + $0x1] ss:$0 sm:$0xff]  ;;  %v619_v54 = vld [vmem:[#allocation7 + $0x2] ss:$0 sm:$0xff] }
  0x2b   :  { %652 = vmatprep.subr.mxu0 %v820_v0  ;;  %661 = vmatprep.subr.mxu1 %v820_v0 }
  0x2c   :  { %653 = vmatpush3.msra.mxu0 %v71_v3  ;;  %662 = vmatpush3.msra.mxu1 %v188_v17 }
  0x2d   :  { %655 = vmatmul.mubr.msk.f32.vlgmr.msra.gmra.mxu0 %vm78_vm1, %v67_v4  ;;  %668 = vmatprep.subr.mxu0 %v820_v0 }
  0x2e   :  { %676 = vmatprep.mubr.msk.f32.mxu0 %vm821_vm0, %v820_v0  ;;  %669 = vmatpush3.msra.mxu0 %v190_v15  ;;  %v406_v15 = vld [vmem:[%s974_s5 + $0x8] sm:$0xff] }
  0x2f   :  { %670 = vmatprep.subr.mxu0 %v820_v0  ;;  %663 = vmatprep.subr.mxu1 %v820_v0 }
  0x30   :  { %671 = vmatpush3.msra.mxu0 %v189_v16  ;;  %664 = vmatpush3.msra.mxu1 %v187_v18  ;;  %v405_v16 = vld [vmem:[%s974_s5] sm:$0xff] }
  0x31   :  { %672 = vmatprep.subr.mxu0 %v820_v0  ;;  %679 = vmatprep.subr.mxu1 %v820_v0 }
  0x32   :  { %673 = vmatpush3.msra.mxu0 %v188_v17 }
  0x33   :  { %674 = vmatprep.subr.mxu0 %v820_v0 }
  0x34   :  { %675 = vmatpush3.msra.mxu0 %v187_v18 }
  0x35   :  { %690 = vmatprep.subr.mxu0 %v820_v0 }
  0xed   :  { %v148_v6 = vpop.f32.mrf.mxu0 }
  0xee   :  { %v149_v7 = vadd.f32 %v612_v5, %v148_v6 }
  0xef   :  { %v656_v8 = vpop.f32.mrf.mxu0 }
  0xf0   :  { %v153_v9 = vsel %vm152_vm2, %v149_v7, 0.0 }
  0xf1   :  { %154 = vadd.xlane.f32.xlu0 %v153_v9 }
 0x17a   :  { %v155_v10 = vpop.xlane.xlu0 %154 }
 0x17b   :  { %v157_v11 = vmul.f32 0.03125, %v155_v10 }
 0x17d   :  { %v158_v12 = vsub.f32 %v149_v7, %v157_v11 }
 0x17f   :  { %v159_v13 = vmul.f32 %v158_v12, %v158_v12 }
 0x181   :  { %v160_v14 = vsel %vm152_vm2, %v159_v13, 0.0  ;;  %v408_v13 = vld [vmem:[%s974_s5 + $0x18] sm:$0xff] }
 0x182   :  { %161 = vadd.xlane.f32.xlu0 %v160_v14  ;;  %v407_v14 = vld [vmem:[%s974_s5 + $0x10] sm:$0xff] }
 0x20b   :  { %v162_v19 = vpop.xlane.xlu0 %161 }
 0x20c   :  { %v163_v20 = vmul.f32 0.03125, %v162_v19 }
 0x20e   :  { %v164_v21 = vadd.f32 1e-05, %v163_v20 }
 0x210   :  { %705 = vrsqrt.f32 %v164_v21 }
 0x21d   :  { %v706_v22 = vpop.eup %705 }
 0x21e   :  { %v166_v24 = vmul.f32 %v706_v22, %v158_v12 }
 0x220   :  { %v171_v26 = vmul.f32 %v614_v23, %v166_v24 }
 0x222   :  { %v176_v27 = vadd.f32 %v615_v25, %v171_v26 }
 0x224   :  { %v177_v28 = vmin.f32 %v176_v27, 30.0  ;;  %v182_v34 = vmul.f32 2.0, %v176_v27 }
 0x226   :  { %v178_v29 = vmul.f32 1.442695, %v177_v28 }
 0x228   :  { %707 = vpow2.f32 %v178_v29 }
 0x235   :  { %v708_v30 = vpop.eup %707 }
 0x236   :  { %v180_v31 = vadd.f32 1.0, %v708_v30 }
 0x238   :  { %v181_v32 = vmul.f32 %v180_v31, %v180_v31 }
 0x23a   :  { %v183_v33 = vadd.f32 1.0, %v181_v32 }
 0x23c   :  { %709 = vrcp.f32 %v183_v33 }
 0x249   :  { %v710_v35 = vpop.eup %709 }
 0x24a   :  { %v185_v36 = vmul.f32 %v710_v35, %v182_v34  ;;  %v621_v34 = vld [vmem:[%s975_s6] ss:$0 sm:$0xff] }
 0x24c   :  { %v186_v37 = vsub.f32 %v176_v27, %v185_v36 }
 0x24e   :  { %666 = vmatmul.mubr.msk.f32.vlgmr.msra.gmra.mxu1 %vm152_vm2, %v186_v37 }
 0x24f   :  { %687 = vmatprep.mubr.msk.f32.mxu1 %vm821_vm0, %v820_v0  ;;  %680 = vmatpush3.msra.mxu1 %v408_v13 }
 0x250   :  { %681 = vmatprep.subr.mxu1 %v820_v0 }
 0x251   :  { %682 = vmatpush3.msra.mxu1 %v407_v14 }
 0x252   :  { %683 = vmatprep.subr.mxu1 %v820_v0 }
 0x253   :  { %684 = vmatpush3.msra.mxu1 %v406_v15 }
 0x254   :  { %685 = vmatprep.subr.mxu1 %v820_v0 }
 0x255   :  { %686 = vmatpush3.msra.mxu1 %v405_v16 }
 0x30e   :  { %v267_v39 = vpop.f32.mrf.mxu1 }
 0x30f   :  { %v268_v40 = vadd.f32 %v616_v38, %v267_v39 }
 0x310   :  { %v667_v41 = vpop.f32.mrf.mxu1 }
 0x311   :  { %v271_v42 = vsel %vm152_vm2, %v268_v40, 0.0 }
 0x312   :  { %272 = vadd.xlane.f32.xlu1 %v271_v42 }
 0x39b   :  { %v273_v43 = vpop.xlane.xlu1 %272 }
 0x39c   :  { %v274_v44 = vmul.f32 0.03125, %v273_v43 }
 0x39e   :  { %v275_v45 = vsub.f32 %v268_v40, %v274_v44 }
 0x3a0   :  { %v276_v46 = vmul.f32 %v275_v45, %v275_v45 }
 0x3a2   :  { %v277_v47 = vsel %vm152_vm2, %v276_v46, 0.0 }
 0x3a3   :  { %278 = vadd.xlane.f32.xlu1 %v277_v47 }
 0x42c   :  { %v279_v48 = vpop.xlane.xlu1 %278 }
 0x42d   :  { %v280_v49 = vmul.f32 0.03125, %v279_v48  ;;  %v623_v48 = vld [vmem:[%s975_s6 + $0x1] ss:$0 sm:$0xff] }
 0x42f   :  { %v281_v50 = vadd.f32 1e-05, %v280_v49 }
 0x431   :  { %711 = vrsqrt.f32 %v281_v50  ;;  %v624_v50 = vld [vmem:[%s975_s6 + $0x2] ss:$0 sm:$0xff]  ;;  %s822_s6 = smov [#allocation8]  }
 0x432   :  { %s602_s23 = sshll.u32 %s822_s6, 4  ;;  %s603_s23 = int_to_ptr.vmem [resolvable:$true] %s602_s23 }
 0x433   :  { %p794_p2 = scmp.lt.s32.totalorder %s603_s23, %s603_s23 }
 0x43e   :  { %v712_v51 = vpop.eup %711 }
 0x43f   :  { %v283_v53 = vmul.f32 %v712_v51, %v275_v45 }
 0x441   :  { %v288_v55 = vmul.f32 %v618_v52, %v283_v53 }
 0x443   :  { %v293_v56 = vadd.f32 %v619_v54, %v288_v55  ;;  %v518_v55 = vld [vmem:[%s976_s7] sm:$0xff] }
 0x445   :  { %v294_v57 = vmin.f32 %v293_v56, 30.0  ;;  %v299_v63 = vmul.f32 2.0, %v293_v56 }
 0x447   :  { %v295_v58 = vmul.f32 1.442695, %v294_v57 }
 0x449   :  { %713 = vpow2.f32 %v295_v58 }
 0x456   :  { %v714_v59 = vpop.eup %713 }
 0x457   :  { %v297_v60 = vadd.f32 1.0, %v714_v59 }
 0x459   :  { %v298_v61 = vmul.f32 %v297_v60, %v297_v60 }
 0x45b   :  { %v300_v62 = vadd.f32 1.0, %v298_v61 }
 0x45d   :  { %715 = vrcp.f32 %v300_v62 }
 0x46a   :  { %v716_v1 = vpop.eup %715 }
 0x46b   :  { %v302_v2 = vmul.f32 %v716_v1, %v299_v63 }
 0x46d   :  { %v303_v3 = vsub.f32 %v293_v56, %v302_v2 }
 0x46f   :  { %677 = vmatmul.mubr.msk.f32.vlgmr.msra.gmra.mxu0 %vm152_vm2, %v303_v3 }
 0x470   :  { %694 = vmatprep.mubr.msk.f32.mxu0 %vm821_vm0, %v820_v0 }
 0x52f   :  { %v373_v4 = vpop.f32.mrf.mxu0 }
 0x530   :  { %v374_v5 = vadd.f32 %v616_v38, %v373_v4 }
 0x531   :  { %v678_v6 = vpop.f32.mrf.mxu0 }
 0x532   :  { %v377_v7 = vsel %vm152_vm2, %v374_v5, 0.0 }
 0x533   :  { %378 = vadd.xlane.f32.xlu0 %v377_v7 }
 0x5bc   :  { %v379_v8 = vpop.xlane.xlu0 %378 }
 0x5bd   :  { %v380_v9 = vmul.f32 0.03125, %v379_v8 }
 0x5bf   :  { %v381_v10 = vsub.f32 %v374_v5, %v380_v9 }
 0x5c1   :  { %v382_v11 = vmul.f32 %v381_v10, %v381_v10 }
 0x5c3   :  { %v383_v12 = vsel %vm152_vm2, %v382_v11, 0.0 }
 0x5c4   :  { %384 = vadd.xlane.f32.xlu1 %v383_v12 }
 0x64d   :  { %v385_v17 = vpop.xlane.xlu1 %384 }
 0x64e   :  { %v386_v18 = vmul.f32 0.03125, %v385_v17 }
 0x650   :  { %v387_v19 = vadd.f32 1e-05, %v386_v18 }
 0x652   :  { %717 = vrsqrt.f32 %v387_v19 }
 0x65f   :  { %v718_v20 = vpop.eup %717 }
 0x660   :  { %v389_v21 = vmul.f32 %v718_v20, %v381_v10 }
 0x662   :  { %v390_v22 = vmul.f32 %v618_v52, %v389_v21 }
 0x664   :  { %v391_v23 = vadd.f32 %v619_v54, %v390_v22  ;;  %v519_v54 = vld [vmem:[%s976_s7 + $0x8] sm:$0xff]  ;;  %s789_s7 = scalar_lea.vmem %s603_s23, 128 }
 0x665   :  { %691 = vmatpush3.msra.mxu0 %v519_v54  ;;  %p790_p1 = scmp.ne.s32.totalorder %s603_s23, %s789_s7  ;;  %p795_p3 = scmp.lt.s32.totalorder %s789_s7, %s789_s7 }
 0x666   :  { %v392_v24 = vmin.f32 %v391_v23, 30.0  ;;  %v397_v30 = vmul.f32 2.0, %v391_v23  ;;  %692 = vmatprep.subr.mxu0 %v820_v0 }
 0x667   :  { %693 = vmatpush3.msra.mxu0 %v518_v55  ;;  %p796_p4 = por %p795_p3, %p794_p2 }
 0x668   :  { %v393_v25 = vmul.f32 1.442695, %v392_v24 }
 0x669   :  { %p797_p5 = pnand %p796_p4, %p790_p1 }
 0x66a   :  { %719 = vpow2.f32 %v393_v25 }
 0x677   :  { %v720_v26 = vpop.eup %719 }
 0x678   :  { %v395_v27 = vadd.f32 1.0, %v720_v26 }
 0x67a   :  { %v396_v28 = vmul.f32 %v395_v27, %v395_v27 }
 0x67c   :  { %v398_v29 = vadd.f32 1.0, %v396_v28 }
 0x67e   :  { %721 = vrcp.f32 %v398_v29 }
 0x68b   :  { %v722_v31 = vpop.eup %721 }
 0x68c   :  { %v400_v32 = vmul.f32 %v722_v31, %v397_v30 }
 0x68e   :  { %v401_v33 = vsub.f32 %v391_v23, %v400_v32 }
 0x690   :  { %688 = vmatmul.mubr.msk.f32.vlgmr.msra.gmra.mxu1 %vm152_vm2, %v401_v33 }
 0x750   :  { %v482_v35 = vpop.f32.mrf.mxu1 }
 0x751   :  { %v483_v36 = vadd.f32 %v621_v34, %v482_v35 }
 0x752   :  { %v689_v37 = vpop.f32.mrf.mxu1 }
 0x753   :  { %v487_v38 = vsel %vm486_vm3, %v483_v36, 0.0 }
 0x754   :  { %488 = vadd.xlane.f32.xlu0 %v487_v38 }
 0x7dd   :  { %v489_v39 = vpop.xlane.xlu0 %488 }
 0x7de   :  { %v491_v40 = vmul.f32 0.0625, %v489_v39 }
 0x7e0   :  { %v492_v41 = vsub.f32 %v483_v36, %v491_v40 }
 0x7e2   :  { %v493_v42 = vmul.f32 %v492_v41, %v492_v41 }
 0x7e4   :  { %v494_v43 = vsel %vm486_vm3, %v493_v42, 0.0 }
 0x7e5   :  { %495 = vadd.xlane.f32.xlu1 %v494_v43 }
 0x86e   :  { %v496_v44 = vpop.xlane.xlu1 %495 }
 0x86f   :  { %v497_v45 = vmul.f32 0.0625, %v496_v44 }
 0x871   :  { %v498_v46 = vadd.f32 1e-05, %v497_v45 }
 0x873   :  { %723 = vrsqrt.f32 %v498_v46 }
 0x880   :  { %v724_v47 = vpop.eup %723 }
 0x881   :  { %v500_v49 = vmul.f32 %v724_v47, %v492_v41 }
 0x883   :  { %v505_v51 = vmul.f32 %v623_v48, %v500_v49 }
 0x885   :  { %v510_v52 = vadd.f32 %v624_v50, %v505_v51 }
 0x887   :  { %v511_v53 = vsel %vm486_vm3, %v510_v52, -inf }
 0x888   :  { %512 = vmax.xlane.f32.xlu0 %v511_v53 }
 0x911   :  { %v513_v56 = vpop.xlane.xlu0 %512 }
 0x912   :  { %v514_v57 = vsub.f32 %v510_v52, %v513_v56 }
 0x914   :  { %v515_v58 = vmax.f32 %v514_v57, -60.0 }
 0x916   :  { %v516_v59 = vmul.f32 1.442695, %v515_v58 }
 0x918   :  { %725 = vpow2.f32 %v516_v59 }
 0x925   :  { %v726_v60 = vpop.eup %725 }
 0x926   :  { %695 = vmatmul.mubr.msk.f32.vlgmr.msra.gmra.mxu0 %vm486_vm3, %v726_v60 }
 0x9e6   :  { %v589_v61 = vpop.f32.mrf.mxu0 }
 0x9e7   :  { %727 = vrcp.f32 %v589_v61 }
 0x9e8   :  { %v696_v62 = vpop.f32.mrf.mxu0 }
 0x9f4   :  { %v728_v63 = vpop.eup %727 }
 0x9f5   :  { %v594_v1 = vmul.f32 %v728_v63, %v726_v60 }
 0x9f7   :  { %595 = vst.msk [vmem:[#allocation8] sm:$0xff] %vm486_vm3, %v594_v1 }
 0x9f8   :  { %800 = shalt.err (!%p797_p5)
}
 0x9f9   :  { %605 = dma.vmem_to_hbm [thread:$0]  %s603_s23, 128, %s977_s8, [#allocation4]  }
 0x9fa   :  { %813 = dma.done.wait [#allocation4], 128  }
 0x9fb   :  { %814 = vsyncadd [#allocation4], 4294967168 }
 0x9fc   :  { %609 = vsyncpa [#allocation3], 1 }
 0x9fd   :  { %610 = vsyncpa [#allocation6], 1 }
 0x9fe   :  { %611 = vsyncpa [#allocation4], 1 }

</bundles_post_ra>
